<compile_context>
chip_gen: v7x
topology: tpu7x:2x2x1
jax: 0.10.0
libtpu: 0.0.40
codegen_flags: <defaults>
</compile_context>

<pallas_src>
import jax
import jax.numpy as jnp
from jax.experimental import pallas as pl
from jax.experimental.pallas import tpu as pltpu

LANE = 128        # TPU vreg lane width
ROW_TILE = 16     # batch-tile row multiple: full bf16 vregs after f32->bf16 cast
PAD_BIAS = -1e30  # bias for padded fc3 lanes: exp(PAD_BIAS - max) == 0 in f32


def _round_up(x, m):
    return ((x + m - 1) // m) * m


# --------------------------------------------------------------------------- #
# Kernel
# --------------------------------------------------------------------------- #
def mlp_kernel(x_ref, w1_ref, b1_ref, w2_ref, b2_ref, w3_ref, b3_ref, out_ref):
    # bf16 MXU operands, f32 accumulation via preferred_element_type.
    # (no-op cast if the producer already hands us bf16 activations)
    x = x_ref[...].astype(jnp.bfloat16)

    # fc1 + ReLU (bias add / ReLU in f32 -> v5e-safe, no bf16 elementwise)
    h1 = jnp.dot(x, w1_ref[...], preferred_element_type=jnp.float32) + b1_ref[...]
    h1 = jnp.maximum(h1, 0.0)

    # fc2 + ReLU
    h2 = jnp.dot(h1.astype(jnp.bfloat16), w2_ref[...],
                 preferred_element_type=jnp.float32) + b2_ref[...]
    h2 = jnp.maximum(h2, 0.0)

    # fc3 (padded lanes, if any, carry bias PAD_BIAS and vanish in softmax)
    logits = jnp.dot(h2.astype(jnp.bfloat16), w3_ref[...],
                     preferred_element_type=jnp.float32) + b3_ref[...]

    # Numerically stable softmax over the last axis (== PyTorch dim=1).
    # Exact divide (NOT approx reciprocal): rows sum to 1 to f32 accuracy; the
    # extra VALU cost is hidden under the MXU at realistic hidden sizes.
    m = jnp.max(logits, axis=-1, keepdims=True)
    e = jnp.exp(logits - m)
    denom = jnp.sum(e, axis=-1, keepdims=True)
    out_ref[...] = (e / denom).astype(out_ref.dtype)


# --------------------------------------------------------------------------- #
# One-time parameter preparation (do NOT re-run per forward call)
# --------------------------------------------------------------------------- #
def prepare_params(params):
    """Convert raw f32 params -> kernel-ready operands, exactly once.

    * weights cast to bf16 for the MXU, biases kept f32
    * hidden dim zero-padded to a 128-lane multiple (padded lanes stay exact 0
      through ReLU and contribute nothing downstream)
    * fc3 columns padded (bias = PAD_BIAS) only when output_dim >= 128 and
      misaligned; small output widths are stored natively (masked vst there is
      far cheaper than a 16x-inflated padded writeback + slice).
    """
    w1, b1, w2, b2, w3, b3 = (
        params["w1"], params["b1"], params["w2"],
        params["b2"], params["w3"], params["b3"],
    )
    input_dim, hidden_dim = w1.shape
    output_dim = w3.shape[1]

    hp = _round_up(hidden_dim, LANE)
    if output_dim % LANE == 0 or output_dim < LANE:
        op = output_dim                       # native width (no writeback inflation)
    else:
        op = _round_up(output_dim, LANE)      # lane-dense stores for wide outputs

    def zpad(a, rows, cols):
        out = jnp.zeros((rows, cols), jnp.float32)
        return out.at[: a.shape[0], : a.shape[1]].set(a)

    w1p = zpad(w1, input_dim, hp)
    w2p = zpad(w2, hp, hp)
    w3p = zpad(w3, hp, op)
    b1p = zpad(b1, 1, hp)
    b2p = zpad(b2, 1, hp)
    b3p = jnp.full((1, op), PAD_BIAS, jnp.float32).at[:, :output_dim].set(b3)

    return {
        "w1": w1p.astype(jnp.bfloat16), "b1": b1p,
        "w2": w2p.astype(jnp.bfloat16), "b2": b2p,
        "w3": w3p.astype(jnp.bfloat16), "b3": b3p,
        "output_dim": output_dim,
    }


def _resident_spec(shape):
    """BlockSpec for an operand that stays in VMEM for the whole grid.

    Constant index_map -> the second pipeline buffer would never be used, so
    request single buffering (halves resident-weight VMEM; critical on v7x).
    """
    idx = lambda i: (0,) * len(shape)
    try:
        return pl.BlockSpec(shape, idx, pipeline_mode=pl.Buffered(1))
    except (TypeError, ValueError):   # older jax without pipeline_mode support
        return pl.BlockSpec(shape, idx)


# --------------------------------------------------------------------------- #
# Forward wrapper
# --------------------------------------------------------------------------- #
def mlp_forward(x, kparams, *, tile_b=512):
    """x: (batch, input_dim) f32 or bf16.  kparams: output of prepare_params."""
    w1, b1, w2, b2, w3, b3 = (
        kparams["w1"], kparams["b1"], kparams["w2"],
        kparams["b2"], kparams["w3"], kparams["b3"],
    )
    output_dim = kparams["output_dim"]
    batch, input_dim = x.shape
    hp = w1.shape[1]
    op = w3.shape[1]

    # Batch tiling: multiple of 16 rows; keep >= 2 grid steps (when batch allows)
    # so v7x megacore can shard the "parallel" batch axis across its 2 TCs.
    tile_b = max(ROW_TILE, (min(tile_b, batch) // ROW_TILE) * ROW_TILE)
    if batch > ROW_TILE and pl.cdiv(batch, tile_b) < 2:
        tile_b = max(ROW_TILE, (pl.cdiv(batch, 2) // ROW_TILE) * ROW_TILE)
    grid = (pl.cdiv(batch, tile_b),)   # partial last block handled by Pallas; no jnp.pad of x

    # VMEM budget: single-buffered bf16 weights + f32 biases + double-buffered
    # streamed x/out tiles + f32 intermediates, with headroom.  Clamp to 64 MiB
    # (v7x physical ceiling; v5e/v6e have 128 MiB physical).
    x_bytes = x.dtype.itemsize
    bytes_weights = 2 * (input_dim * hp + hp * hp + hp * op)
    bytes_biases = 4 * (2 * hp + op)
    bytes_stream = 2 * (tile_b * input_dim * x_bytes + tile_b * op * 4)
    bytes_interm = 4 * tile_b * (2 * hp + 2 * op)
    vmem_needed = bytes_weights + bytes_biases + bytes_stream + bytes_interm
    vmem_limit = int(min(max(int(vmem_needed * 1.5), 32 << 20), 64 << 20))

    out = pl.pallas_call(
        mlp_kernel,
        out_shape=jax.ShapeDtypeStruct((batch, op), jnp.float32),
        grid=grid,
        in_specs=[
            pl.BlockSpec((tile_b, input_dim), lambda i: (i, 0)),  # x tile (streamed, double-buffered)
            _resident_spec((input_dim, hp)),                      # w1
            _resident_spec((1, hp)),                              # b1
            _resident_spec((hp, hp)),                             # w2
            _resident_spec((1, hp)),                              # b2
            _resident_spec((hp, op)),                             # w3
            _resident_spec((1, op)),                              # b3
        ],
        out_specs=pl.BlockSpec((tile_b, op), lambda i: (i, 0)),
        compiler_params=pltpu.CompilerParams(
            dimension_semantics=("parallel",),    # batch axis -> v7x megacore split
            vmem_limit_bytes=vmem_limit,
        ),
    )(x, w1, b1, w2, b2, w3, b3)

    if op != output_dim:
        # Only taken for wide, misaligned output_dim; ideally fold into consumer.
        out = out[:, :output_dim]
    return out


# --------------------------------------------------------------------------- #
# Init (mimics nn.Linear: uniform(-1/sqrt(fan_in), 1/sqrt(fan_in)))
# --------------------------------------------------------------------------- #
def init_params(key, input_dim, hidden_dim, output_dim):
    keys = jax.random.split(key, 6)

    def linear(kw, kb, fan_in, fan_out):
        bound = 1.0 / jnp.sqrt(fan_in)
        w = jax.random.uniform(kw, (fan_in, fan_out), jnp.float32, -bound, bound)
        b = jax.random.uniform(kb, (1, fan_out), jnp.float32, -bound, bound)
        return w, b

    w1, b1 = linear(keys[0], keys[1], input_dim, hidden_dim)
    w2, b2 = linear(keys[2], keys[3], hidden_dim, hidden_dim)
    w3, b3 = linear(keys[4], keys[5], hidden_dim, output_dim)
    return {"w1": w1, "b1": b1, "w2": w2, "b2": b2, "w3": w3, "b3": b3}


if __name__ == "__main__":
    input_dim, hidden_dim, output_dim = 16, 32, 8
    batch = 64

    key = jax.random.PRNGKey(0)
    k_x, k_p = jax.random.split(key)

    x = jax.random.normal(k_x, (batch, input_dim), jnp.float32)
    params = init_params(k_p, input_dim, hidden_dim, output_dim)

    # One-time weight prep (bf16 cast + lane padding) -- NOT per forward call.
    kparams = prepare_params(params)

    # tile_b auto-shrinks to 32 rows -> 2 batch tiles (exercises the pipelined
    # grid path and keeps both v7x TensorCores busy).
    out = mlp_forward(x, kparams)
    jax.block_until_ready(out)

    # Plain-JAX f32 reference; bf16 MXU operands => loosened elementwise tolerance.
    h1 = jnp.maximum(x @ params["w1"] + params["b1"], 0.0)
    h2 = jnp.maximum(h1 @ params["w2"] + params["b2"], 0.0)
    logits = h2 @ params["w3"] + params["b3"]
    ref = jax.nn.softmax(logits, axis=1)

    assert out.shape == (batch, output_dim), out.shape
    max_err = float(jnp.max(jnp.abs(out - ref)))
    assert jnp.allclose(out, ref, atol=2e-2, rtol=0.0), max_err
    # Exact divide in the kernel => rows sum to 1 to f32 accuracy.
    assert jnp.allclose(jnp.sum(out, axis=1), 1.0, atol=1e-3)

    print("KERNEL_OK")
</pallas_src>

<mosaic_0001>
module attributes {stable_mosaic.version = 11 : i64} {
  func.func @mlp_kernel(%arg0: i32, %arg1: memref<32x16xf32, #tpu.memory_space<vmem>>, %arg2: memref<16x128xbf16, #tpu.memory_space<vmem>>, %arg3: memref<1x128xf32, #tpu.memory_space<vmem>>, %arg4: memref<128x128xbf16, #tpu.memory_space<vmem>>, %arg5: memref<1x128xf32, #tpu.memory_space<vmem>>, %arg6: memref<128x8xbf16, #tpu.memory_space<vmem>>, %arg7: memref<1x8xf32, #tpu.memory_space<vmem>>, %arg8: memref<32x8xf32, #tpu.memory_space<vmem>>) attributes {dimension_semantics = [#tpu.dimension_semantics<parallel>], iteration_bounds = array<i64: 2>, scalar_prefetch = 0 : i64, scratch_operands = 0 : i64, tpu.core_type = #tpu.core_type<tc>, window_params = [{transform_indices = @transform_0, window_bounds = array<i64: 32, 16>}, {pipeline_mode = #tpu.pipeline_mode<synchronous>, transform_indices = @transform_1, window_bounds = array<i64: 16, 128>}, {pipeline_mode = #tpu.pipeline_mode<synchronous>, transform_indices = @transform_2, window_bounds = array<i64: 1, 128>}, {pipeline_mode = #tpu.pipeline_mode<synchronous>, transform_indices = @transform_3, window_bounds = array<i64: 128, 128>}, {pipeline_mode = #tpu.pipeline_mode<synchronous>, transform_indices = @transform_4, window_bounds = array<i64: 1, 128>}, {pipeline_mode = #tpu.pipeline_mode<synchronous>, transform_indices = @transform_5, window_bounds = array<i64: 128, 8>}, {pipeline_mode = #tpu.pipeline_mode<synchronous>, transform_indices = @transform_6, window_bounds = array<i64: 1, 8>}, {transform_indices = @transform_7, window_bounds = array<i64: 32, 8>}]} {
    %c0 = arith.constant 0 : index
    %c0_0 = arith.constant 0 : index
    %0 = vector.load %arg1[%c0, %c0_0] : memref<32x16xf32, #tpu.memory_space<vmem>>, vector<32x16xf32>
    %1 = arith.truncf %0 : vector<32x16xf32> to vector<32x16xbf16>
    %c0_1 = arith.constant 0 : index
    %c0_2 = arith.constant 0 : index
    %2 = vector.load %arg2[%c0_1, %c0_2] : memref<16x128xbf16, #tpu.memory_space<vmem>>, vector<16x128xbf16>
    %cst = arith.constant dense<0.000000e+00> : vector<32x128xf32>
    %3 = tpu.matmul %1, %2, %cst {dimension_numbers = #tpu.dot_dimension_numbers<[1], [0], [0], [1], [0, 0, 1, 1], [], []>} : vector<32x16xbf16>, vector<16x128xbf16>, vector<32x128xf32> -> vector<32x128xf32>
    %c0_3 = arith.constant 0 : index
    %c0_4 = arith.constant 0 : index
    %4 = vector.load %arg3[%c0_3, %c0_4] : memref<1x128xf32, #tpu.memory_space<vmem>>, vector<1x128xf32>
    %5 = vector.broadcast %4 : vector<1x128xf32> to vector<32x128xf32>
    %6 = arith.addf %3, %5 : vector<32x128xf32>
    %cst_5 = arith.constant 0.000000e+00 : f32
    %7 = vector.broadcast %cst_5 : f32 to vector<32x128xf32>
    %8 = arith.maximumf %6, %7 : vector<32x128xf32>
    %9 = arith.truncf %8 : vector<32x128xf32> to vector<32x128xbf16>
    %c0_6 = arith.constant 0 : index
    %c0_7 = arith.constant 0 : index
    %10 = vector.load %arg4[%c0_6, %c0_7] : memref<128x128xbf16, #tpu.memory_space<vmem>>, vector<128x128xbf16>
    %cst_8 = arith.constant dense<0.000000e+00> : vector<32x128xf32>
    %11 = tpu.matmul %9, %10, %cst_8 {dimension_numbers = #tpu.dot_dimension_numbers<[1], [0], [0], [1], [0, 0, 1, 1], [], []>} : vector<32x128xbf16>, vector<128x128xbf16>, vector<32x128xf32> -> vector<32x128xf32>
    %c0_9 = arith.constant 0 : index
    %c0_10 = arith.constant 0 : index
    %12 = vector.load %arg5[%c0_9, %c0_10] : memref<1x128xf32, #tpu.memory_space<vmem>>, vector<1x128xf32>
    %13 = vector.broadcast %12 : vector<1x128xf32> to vector<32x128xf32>
    %14 = arith.addf %11, %13 : vector<32x128xf32>
    %cst_11 = arith.constant 0.000000e+00 : f32
    %15 = vector.broadcast %cst_11 : f32 to vector<32x128xf32>
    %16 = arith.maximumf %14, %15 : vector<32x128xf32>
    %17 = arith.truncf %16 : vector<32x128xf32> to vector<32x128xbf16>
    %c0_12 = arith.constant 0 : index
    %c0_13 = arith.constant 0 : index
    %18 = vector.load %arg6[%c0_12, %c0_13] : memref<128x8xbf16, #tpu.memory_space<vmem>>, vector<128x8xbf16>
    %cst_14 = arith.constant dense<0.000000e+00> : vector<32x8xf32>
    %19 = tpu.matmul %17, %18, %cst_14 {dimension_numbers = #tpu.dot_dimension_numbers<[1], [0], [0], [1], [0, 0, 1, 1], [], []>} : vector<32x128xbf16>, vector<128x8xbf16>, vector<32x8xf32> -> vector<32x8xf32>
    %c0_15 = arith.constant 0 : index
    %c0_16 = arith.constant 0 : index
    %20 = vector.load %arg7[%c0_15, %c0_16] : memref<1x8xf32, #tpu.memory_space<vmem>>, vector<1x8xf32>
    %21 = vector.broadcast %20 : vector<1x8xf32> to vector<32x8xf32>
    %22 = arith.addf %19, %21 : vector<32x8xf32>
    %cst_17 = arith.constant dense<0xFF800000> : vector<32xf32>
    %23 = vector.multi_reduction <maximumf>, %22, %cst_17 [1] : vector<32x8xf32> to vector<32xf32>
    %24 = vector.shape_cast %23 : vector<32xf32> to vector<32x1xf32>
    %25 = vector.broadcast %24 : vector<32x1xf32> to vector<32x8xf32>
    %26 = arith.subf %22, %25 : vector<32x8xf32>
    %27 = math.exp %26 : vector<32x8xf32>
    %cst_18 = arith.constant dense<0.000000e+00> : vector<32xf32>
    %28 = vector.multi_reduction <add>, %27, %cst_18 [1] : vector<32x8xf32> to vector<32xf32>
    %29 = vector.shape_cast %28 : vector<32xf32> to vector<32x1xf32>
    %30 = vector.broadcast %29 : vector<32x1xf32> to vector<32x8xf32>
    %31 = arith.divf %27, %30 : vector<32x8xf32>
    %c0_19 = arith.constant 0 : index
    %c0_20 = arith.constant 0 : index
    %32 = vector.load %arg8[%c0_19, %c0_20] : memref<32x8xf32, #tpu.memory_space<vmem>>, vector<32x8xf32>
    tpu.vector_store %arg8[%c0_19, %c0_20], %31 {strides = array<i32>} : memref<32x8xf32, #tpu.memory_space<vmem>>, vector<32x8xf32>,
    return
  }
  func.func @transform_0(%arg0: i32) -> (i32, i32) {
    %c0_i32 = arith.constant 0 : i32
    %c0_i32_0 = arith.constant 0 : i32
    return %arg0, %c0_i32 : i32, i32
  }
  func.func @transform_1(%arg0: i32) -> (i32, i32) {
    %c0_i32 = arith.constant 0 : i32
    %c0_i32_0 = arith.constant 0 : i32
    %c0_i32_1 = arith.constant 0 : i32
    return %c0_i32, %c0_i32_0 : i32, i32
  }
  func.func @transform_2(%arg0: i32) -> (i32, i32) {
    %c0_i32 = arith.constant 0 : i32
    %c0_i32_0 = arith.constant 0 : i32
    %c0_i32_1 = arith.constant 0 : i32
    return %c0_i32, %c0_i32_0 : i32, i32
  }
  func.func @transform_3(%arg0: i32) -> (i32, i32) {
    %c0_i32 = arith.constant 0 : i32
    %c0_i32_0 = arith.constant 0 : i32
    %c0_i32_1 = arith.constant 0 : i32
    return %c0_i32, %c0_i32_0 : i32, i32
  }
  func.func @transform_4(%arg0: i32) -> (i32, i32) {
    %c0_i32 = arith.constant 0 : i32
    %c0_i32_0 = arith.constant 0 : i32
    %c0_i32_1 = arith.constant 0 : i32
    return %c0_i32, %c0_i32_0 : i32, i32
  }
  func.func @transform_5(%arg0: i32) -> (i32, i32) {
    %c0_i32 = arith.constant 0 : i32
    %c0_i32_0 = arith.constant 0 : i32
    %c0_i32_1 = arith.constant 0 : i32
    return %c0_i32, %c0_i32_0 : i32, i32
  }
  func.func @transform_6(%arg0: i32) -> (i32, i32) {
    %c0_i32 = arith.constant 0 : i32
    %c0_i32_0 = arith.constant 0 : i32
    %c0_i32_1 = arith.constant 0 : i32
    return %c0_i32, %c0_i32_0 : i32, i32
  }
  func.func @transform_7(%arg0: i32) -> (i32, i32) {
    %c0_i32 = arith.constant 0 : i32
    %c0_i32_0 = arith.constant 0 : i32
    return %arg0, %c0_i32 : i32, i32
  }
}

</mosaic_0001>

<bundles_post_ra>
// kernel: tpu_custom_call.1
= control target key start
LH: loop header
LB: loop body
LE: loop exit
PB: predicated region body
PF: predicated region fallthrough
CT: control target
= control target key end

     0   :  { %s908_s24 = smov 0   ;;  %s1004_s0 = inlined_call_operand.vmem [shape: f32[64,16], index: 0, kind: input, shape index: {}]   ;;  %s1005_s1 = inlined_call_operand.vmem [shape: bf16[16,128], index: 1, kind: input, shape index: {}]   ;;  %s1006_s2 = inlined_call_operand.vmem [shape: f32[1,128], index: 2, kind: input, shape index: {}]   ;;  %s1007_s3 = inlined_call_operand.vmem [shape: bf16[128,128], index: 3, kind: input, shape index: {}]   ;;  %s1008_s4 = inlined_call_operand.vmem [shape: f32[1,128], index: 4, kind: input, shape index: {}]   ;;  %s1009_s5 = inlined_call_operand.vmem [shape: bf16[128,8], index: 5, kind: input, shape index: {}]   ;;  %s1010_s6 = inlined_call_operand.vmem [shape: f32[1,8], index: 6, kind: input, shape index: {}]   ;;  %s1011_s7 = inlined_call_operand.vmem [shape: f32[64,8], index: 7, kind: output, shape index: {}]  }
   0x1 LB: > { %s717_s25 = sadd.s32 4294967295, %s866_s24   ;;  %p721_p0 = scmp.ge.s32.totalorder %s866_s24, 1  ;;  %s866_s24 = sphi %s908_s24, %s17_s24  }
   0x2   : > { %p238_p1 = scmp.lt.s32.totalorder %s866_s24, 3 }
   0x4   : > { %p239_p2 = pnand %p721_p0, %p238_p1 }
   0x5   : > { %v827_v0 = vld [vmem:[%s1005_s1] sm:$0xff] (!%p239_p2)   ;;  %s722_s28 = sshll.u32 (!%p239_p2), %s717_s25, 2  ;;  %v829_v2 = vld [vmem:[%s1007_s3 + $0x8] sm:$0xff] (!%p239_p2)   ;;  %v830_v3 = vld [vmem:[%s1007_s3 + $0x10] sm:$0xff] (!%p239_p2)   ;;  %vm304_vm0 = vcmask (!%p239_p2), 130048   ;;  %vm612_vm1 = vcmask (!%p239_p2), 64512  }
   0x6   : > { %242 = sbr.rel (%p239_p2) target bundleno = 1002 (0x3ea), region = 48  ;;  %p271_p3 = scmp.lt.s32.totalorder (!%p239_p2), %s722_s28, 7  ;;  %773 = vmatprep.subr.bf16.mxu0 (!%p239_p2), %v827_v0  ;;  %v828_v1 = vld [vmem:[%s1007_s3] sm:$0xff] (!%p239_p2)   ;;  %v831_v9 = vld [vmem:[%s1007_s3 + $0x18] sm:$0xff] (!%p239_p2)   ;;  %v833_v12 = vld [vmem:[%s1007_s3 + $0x28] sm:$0xff] (!%p239_p2)  }
   0x7   : > { %774 = vmatpush3.bf16.msra.mxu0 (!%p239_p2), %v827_v0  ;;  %779 = vmatprep.subr.bf16.mxu1 (!%p239_p2), %v828_v1  ;;  %v832_v11 = vld [vmem:[%s1007_s3 + $0x20] sm:$0xff] (!%p239_p2)   ;;  %v834_v13 = vld [vmem:[%s1007_s3 + $0x30] sm:$0xff] (!%p239_p2)   ;;  %v835_v14 = vld [vmem:[%s1007_s3 + $0x38] sm:$0xff] (!%p239_p2)  }
   0x8   : > { %780 = vmatpush3.bf16.msra.mxu1 (!%p239_p2), %v828_v1  ;;  %v836_v15 = vld [vmem:[%s1009_s5] sm:$0xff] (!%p239_p2)   ;;  %v837_v16 = vld [vmem:[%s1009_s5 + $0x8] sm:$0xff] (!%p239_p2)   ;;  %v838_v17 = vld [vmem:[%s1009_s5 + $0x10] sm:$0xff] (!%p239_p2)  }
   0x9   : > { %781 = vmatprep.subr.bf16.mxu1 (!%p239_p2), %v829_v2  ;;  %799 = vmatprep.subr.bf16.mxu0 (!%p239_p2), %v836_v15  ;;  %v839_v18 = vld [vmem:[%s1009_s5 + $0x18] sm:$0xff] (!%p239_p2)   ;;  %v840_v19 = vld [vmem:[%s1009_s5 + $0x20] sm:$0xff] (!%p239_p2)   ;;  %v841_v20 = vld [vmem:[%s1009_s5 + $0x28] sm:$0xff] (!%p239_p2)  }
   0xa   : > { %v726_v21 = vld [vmem:[%s1006_s2] ss:$0 sm:$0xff] (!%p239_p2)  ;;  %v842_v36 = vld [vmem:[%s1009_s5 + $0x30] sm:$0xff] (!%p239_p2)   ;;  %v843_v37 = vld [vmem:[%s1009_s5 + $0x38] sm:$0xff] (!%p239_p2)  }
   0xb   : > { %v730_v38 = vld [vmem:[%s1008_s4] ss:$0 sm:$0xff] (!%p239_p2) }
   0xc   : > { %782 = vmatpush3.bf16.msra.mxu1 (!%p239_p2), %v829_v2  ;;  %v739_v53 = vld [vmem:[%s1010_s6] ss:$0 sm:$0xff] (!%p239_p2) }
   0xd   : > { %s1013_s28 = smov (!%p271_p3, %s722_s28), 7  ;;  %783 = vmatprep.subr.bf16.mxu1 %v830_v3 }
   0xe   : > { %s723_s10 = sshll.u32 %s1013_s28, 3 }
   0xf   : > { %s274_s13 = scalar_lea.vmem %s1004_s0, %s723_s10  ;;  %s280_s9 = scalar_lea.vmem %s1011_s7, %s723_s10 }
  0x10   : > { %v283_v4 = vld [vmem:[%s274_s13] sm:$0xff]  ;;  %v284_v5 = vld [vmem:[%s274_s13 + $0x8] sm:$0xff]  ;;  %v285_v6 = vld [vmem:[%s274_s13 + $0x10] sm:$0xff]  ;;  %784 = vmatpush3.bf16.msra.mxu1 %v830_v3 }
  0x11   : > { %v287_v7 = vpack.c.bf16 %v284_v5, %v283_v4  ;;  %v286_v8 = vld [vmem:[%s274_s13 + $0x18] sm:$0xff]  ;;  %785 = vmatprep.subr.bf16.mxu1 %v831_v9 }
  0x12   : > { %v288_v10 = vpack.c.bf16 %v286_v8, %v285_v6 }
  0x13   : > { %775 = vmatprep.mubr.msk.bf16.mxu0 %vm304_vm0, %v287_v7 }
  0x14   : > { %776 = vmatmul.mubr.msk.bf16.vlgmr.msra.gmra.mrb[0].mxu0 %vm304_vm0, %v288_v10  ;;  %786 = vmatpush3.bf16.msra.mxu1 %v831_v9 }
  0x15   : > { %787 = vmatprep.subr.bf16.mxu1 %v832_v11  ;;  %800 = vmatpush3.bf16.msra.mxu0 %v836_v15 }
  0x16   : > { %801 = vmatprep.subr.bf16.mxu0 %v837_v16 }
  0x18   : > { %788 = vmatpush3.bf16.msra.mxu1 %v832_v11 }
  0x19   : > { %789 = vmatprep.subr.bf16.mxu1 %v833_v12  ;;  %802 = vmatpush3.bf16.msra.mxu0 %v837_v16 }
  0x1a   : > { %803 = vmatprep.subr.bf16.mxu0 %v838_v17 }
  0x1c   : > { %790 = vmatpush3.bf16.msra.mxu1 %v833_v12 }
  0x1d   : > { %791 = vmatprep.subr.bf16.mxu1 %v834_v13  ;;  %804 = vmatpush3.bf16.msra.mxu0 %v838_v17 }
  0x1e   : > { %805 = vmatprep.subr.bf16.mxu0 %v839_v18 }
  0x20   : > { %792 = vmatpush3.bf16.msra.mxu1 %v834_v13 }
  0x21   : > { %793 = vmatprep.subr.bf16.mxu1 %v835_v14  ;;  %806 = vmatpush3.bf16.msra.mxu0 %v839_v18 }
  0x22   : > { %807 = vmatprep.subr.bf16.mxu0 %v840_v19 }
  0x24   : > { %794 = vmatpush3.bf16.msra.mxu1 %v835_v14 }
  0x25   : > { %808 = vmatpush3.bf16.msra.mxu0 %v840_v19 }
  0x26   : > { %809 = vmatprep.subr.bf16.mxu0 %v841_v20 }
  0x29   : > { %810 = vmatpush3.bf16.msra.mxu0 %v841_v20 }
  0x2a   : > { %811 = vmatprep.subr.bf16.mxu0 %v842_v36 }
  0x2d   : > { %812 = vmatpush3.bf16.msra.mxu0 %v842_v36 }
  0x2e   : > { %813 = vmatprep.subr.bf16.mxu0 %v843_v37 }
  0x31   : > { %814 = vmatpush3.bf16.msra.mxu0 %v843_v37 }
  0xe7   : > { %v777_v22 = vpop.f32.mrb[0].mxu0 }
  0xe8   : > { %v354_v23 = vadd.f32 %v777_v22, %v726_v21  ;;  %v345_v24 = vpop.f32.mrb[1].mxu0 }
  0xe9   : > { %v346_v25 = vadd.f32 %v726_v21, %v345_v24  ;;  %v778_v26 = vpop.f32.mrb[2].mxu0 }
  0xea   : > { %v357_v27 = vadd.f32 %v778_v26, %v726_v21  ;;  %v348_v28 = vpop.f32.mrb[3].mxu0  ;;  %v362_v30 = vmax.f32 %v354_v23, 0.0 }
  0xeb   : > { %v349_v29 = vadd.f32 %v726_v21, %v348_v28  ;;  %v360_v32 = vmax.f32 %v346_v25, 0.0 }
  0xec   : > { %v363_v31 = vmax.f32 %v357_v27, 0.0 }
  0xed   : > { %v361_v33 = vmax.f32 %v349_v29, 0.0 }
  0xee   : > { %v365_v34 = vpack.c.bf16 %v363_v31, %v362_v30 }
  0xef   : > { %v364_v35 = vpack.c.bf16 %v361_v33, %v360_v32 }
  0xf1   : > { %795 = vmatprep.mubr.bf16.mxu1 %v364_v35 }
  0xf2   : > { %796 = vmatmul.mubr.bf16.vlgmr.msra.gmra.mrb[0].mxu1 %v365_v34 }
 0x1c5   : > { %v797_v39 = vpop.f32.mrb[0].mxu1 }
 0x1c6   : > { %v480_v40 = vadd.f32 %v797_v39, %v730_v38  ;;  %v471_v41 = vpop.f32.mrb[1].mxu1 }
 0x1c7   : > { %v472_v42 = vadd.f32 %v730_v38, %v471_v41  ;;  %v798_v43 = vpop.f32.mrb[2].mxu1 }
 0x1c8   : > { %v483_v44 = vadd.f32 %v798_v43, %v730_v38  ;;  %v474_v45 = vpop.f32.mrb[3].mxu1  ;;  %v488_v47 = vmax.f32 %v480_v40, 0.0 }
 0x1c9   : > { %v475_v46 = vadd.f32 %v730_v38, %v474_v45  ;;  %v486_v49 = vmax.f32 %v472_v42, 0.0 }
 0x1ca   : > { %v489_v48 = vmax.f32 %v483_v44, 0.0 }
 0x1cb   : > { %v487_v50 = vmax.f32 %v475_v46, 0.0 }
 0x1cc   : > { %v491_v51 = vpack.c.bf16 %v489_v48, %v488_v47 }
 0x1cd   : > { %v490_v52 = vpack.c.bf16 %v487_v50, %v486_v49 }
 0x1cf   : > { %815 = vmatprep.mubr.bf16.mxu0 %v490_v52 }
 0x1d0   : > { %816 = vmatmul.mubr.bf16.vlgmr.msra.gmra.mrb[4].mxu0 %v491_v51 }
 0x2a3   : > { %v817_v54 = vpop.f32.mrb[4].mxu0 }
 0x2a4   : > { %v606_v55 = vadd.f32 %v817_v54, %v739_v53  ;;  %v597_v56 = vpop.f32.mrb[5].mxu0 }
 0x2a5   : > { %v598_v57 = vadd.f32 %v739_v53, %v597_v56  ;;  %v818_v58 = vpop.f32.mrb[6].mxu0 }
 0x2a6   : > { %v609_v59 = vadd.f32 %v818_v58, %v739_v53  ;;  %v600_v60 = vpop.f32.mrb[7].mxu0  ;;  %v619_v61 = vsel %vm612_vm1, %v606_v55, -inf }
 0x2a7   : > { %v601_v62 = vadd.f32 %v739_v53, %v600_v60  ;;  %620 = vmax.xlane.f32.xlu1 %v619_v61  ;;  %v613_v63 = vsel %vm612_vm1, %v598_v57, -inf }
 0x2a8   : > { %614 = vmax.xlane.f32.xlu0 %v613_v63  ;;  %v622_v0 = vsel %vm612_vm1, %v609_v59, -inf }
 0x2a9   : > { %v616_v1 = vsel %vm612_vm1, %v601_v62, -inf }
 0x2ab   : > { %623 = vmax.xlane.f32.xlu1 %v622_v0 }
 0x2ac   : > { %617 = vmax.xlane.f32.xlu0 %v616_v1 }
 0x334   : > { %v621_v2 = vpop.xlane.xlu1 %620 }
 0x335   : > { %v627_v3 = vsub.f32 %v606_v55, %v621_v2  ;;  %v615_v4 = vpop.xlane.xlu0 %614 }
 0x336   : > { %v625_v5 = vsub.f32 %v598_v57, %v615_v4 }
 0x337   : > { %v633_v6 = vmul.f32 1.442695, %v627_v3 }
 0x338   : > { %v629_v7 = vmul.f32 1.442695, %v625_v5  ;;  %v624_v8 = vpop.xlane.xlu1 %623 }
 0x339   : > { %v628_v9 = vsub.f32 %v609_v59, %v624_v8  ;;  %v618_v10 = vpop.xlane.xlu0 %617 }
 0x33a   : > { %844 = vpow2.f32 %v629_v7  ;;  %v626_v11 = vsub.f32 %v601_v62, %v618_v10 }
 0x33b   : > { %846 = vpow2.f32 %v633_v6  ;;  %v635_v12 = vmul.f32 1.442695, %v628_v9 }
 0x33c   : > { %v631_v13 = vmul.f32 1.442695, %v626_v11 }
 0x33e   : > { %848 = vpow2.f32 %v631_v13 }
 0x33f   : > { %850 = vpow2.f32 %v635_v12 }
 0x344   : > { %v845_v14 = vpop.eup %844 }
 0x345   : > { %v637_v15 = vsel %vm612_vm1, %v845_v14, 0.0  ;;  %v847_v16 = vpop.eup %846 }
 0x346   : > { %638 = vadd.xlane.f32.xlu0 %v637_v15  ;;  %v643_v18 = vsel %vm612_vm1, %v847_v16, 0.0 }
 0x348   : > { %v849_v17 = vpop.eup %848 }
 0x349   : > { %v640_v19 = vsel %vm612_vm1, %v849_v17, 0.0  ;;  %v851_v20 = vpop.eup %850 }
 0x34a   : > { %644 = vadd.xlane.f32.xlu0 %v643_v18  ;;  %641 = vadd.xlane.f32.xlu1 %v640_v19  ;;  %v646_v21 = vsel %vm612_vm1, %v851_v20, 0.0 }
 0x34e   : > { %647 = vadd.xlane.f32.xlu1 %v646_v21 }
 0x3d3   : > { %v639_v22 = vpop.xlane.xlu0 %638 }
 0x3d4   : > { %852 = vrcp.f32 %v639_v22 }
 0x3d7   : > { %v642_v23 = vpop.xlane.xlu1 %641  ;;  %v645_v24 = vpop.xlane.xlu0 %644 }
 0x3d8   : > { %854 = vrcp.f32 %v642_v23 }
 0x3d9   : > { %856 = vrcp.f32 %v645_v24 }
 0x3db   : > { %v648_v25 = vpop.xlane.xlu1 %647 }
 0x3dc   : > { %858 = vrcp.f32 %v648_v25 }
 0x3de   : > { %v853_v26 = vpop.eup %852 }
 0x3df   : > { %v650_v27 = vmul.f32 %v853_v26, %v845_v14 }
 0x3e1   : > { %657 = vst.msk [vmem:[%s280_s9] sm:$0xff] %vm612_vm1, %v650_v27 }
 0x3e2   : > { %v855_v28 = vpop.eup %854 }
 0x3e3   : > { %v857_v29 = vpop.eup %856  ;;  %v652_v30 = vmul.f32 %v855_v28, %v849_v17 }
 0x3e4   : > { %v654_v31 = vmul.f32 %v857_v29, %v847_v16 }
 0x3e5   : > { %658 = vst.msk [vmem:[%s280_s9 + $0x8] sm:$0xff] %vm612_vm1, %v652_v30 }
 0x3e6   : > { %v859_v32 = vpop.eup %858  ;;  %659 = vst.msk [vmem:[%s280_s9 + $0x10] sm:$0xff] %vm612_vm1, %v654_v31 }
 0x3e7   : > { %v656_v33 = vmul.f32 %v859_v32, %v851_v20 }
 0x3e9   : > { %660 = vst.msk [vmem:[%s280_s9 + $0x18] sm:$0xff] %vm612_vm1, %v656_v33 }
 0x3ea PF: > { %s17_s24 = sadd.s32 1, %s866_s24  }
 0x3eb   : > { %p14_p4 = scmp.ge.s32.totalorder %s17_s24, 4  }
 0x3ed   :  { %16 = sbr.rel (!%p14_p4) target bundleno = 1 (0x1), region = 78 }

</bundles_post_ra>
